<compile_context>
chip_gen: v6e
topology: v6e:2x2x1
jax: 0.10.0
libtpu: 0.0.40
codegen_flags: <defaults>
</compile_context>

<pallas_src>
import functools
import math
import numpy as np
import jax
import jax.numpy as jnp
from jax.experimental import pallas as pl
from jax.experimental.pallas import tpu as pltpu

OBS_DIM = 16   # flat observation dim
INDIM = 64     # latent width / `indim` of the matching head
BATCH = 8


def _round_up(x, m):
    return ((x + m - 1) // m) * m


def _bf16_elementwise_ok():
    """bf16 bias-add/tanh only on generations with bf16 VPU/EUP (v6e, v7x)."""
    try:
        kind = jax.devices()[0].device_kind.lower()
    except Exception:
        return False
    return ("v6" in kind) or ("v7" in kind) or ("7x" in kind)


# ---------------------------------------------------------------------------
# Deterministic orthogonal init (numpy port of baselines_orthogonal_)
# ---------------------------------------------------------------------------
def baselines_orthogonal(shape, gain, rng):
    rows = shape[0]
    cols = int(np.prod(shape)) // rows
    flattened = rng.normal(0.0, 1.0, (cols, rows))
    u, _, v = np.linalg.svd(flattened, full_matrices=False)
    q = u if u.shape == (cols, rows) else v
    assert q.shape == (cols, rows)
    q = q.transpose()
    assert q.shape[0] == shape[0]
    q = q.reshape(shape)
    return (gain * q).astype(np.float32)


def make_params():
    rng = np.random.default_rng(0)
    g = float(math.sqrt(2))
    # PyTorch Linear weights are (out, in); transpose to (in, out) so the
    # kernel computes y = x @ W.  Weights stored bf16 for the MXU; biases f32.
    w1 = baselines_orthogonal((INDIM, OBS_DIM), g, rng)      # latent layer 1
    w2 = baselines_orthogonal((INDIM, INDIM), g, rng)        # latent layer 2
    wm = baselines_orthogonal((1, INDIM), 1.0, rng)          # matching head (gain=1.0)
    # Biases keep PyTorch Linear default init (reset_parameters only re-inits weights).
    b1 = rng.uniform(-1.0, 1.0, (1, INDIM)) / math.sqrt(OBS_DIM)
    b2 = rng.uniform(-1.0, 1.0, (1, INDIM)) / math.sqrt(INDIM)
    bm = rng.uniform(-1.0, 1.0, (1, 1)) / math.sqrt(INDIM)
    return dict(
        w1=jnp.asarray(w1.T, jnp.bfloat16),        # (OBS_DIM, INDIM)
        b1=jnp.asarray(b1, jnp.float32),           # (1, INDIM)
        w2=jnp.asarray(w2.T, jnp.bfloat16),        # (INDIM, INDIM)
        b2=jnp.asarray(b2, jnp.float32),           # (1, INDIM)
        wm=jnp.asarray(wm, jnp.float32),           # (1, INDIM) row, used on the VPU
        bm=jnp.asarray(bm, jnp.float32),           # (1, 1) scalar, lives in SMEM
    )


# ---------------------------------------------------------------------------
# Pallas kernel: fused latent MLP + value head for one batch tile
# ---------------------------------------------------------------------------
def critic_kernel(obs_ref, w1_ref, b1_ref, w2_ref, b2_ref, wm_ref, bm_ref, out_ref,
                  *, act_dtype):
    # bf16 operands -> MXU, f32 accumulate; bias-add + tanh in act_dtype
    # (bf16 on v6e/v7x, f32 on v5e).
    obs = obs_ref[...]                                                   # (TILE_B, OBS_DIM)
    if obs.dtype != jnp.bfloat16:
        obs = obs.astype(jnp.bfloat16)                                   # compat path for f32 obs
    z1 = jnp.dot(obs, w1_ref[...], preferred_element_type=jnp.float32) + b1_ref[...]
    h1 = jnp.tanh(z1.astype(act_dtype))                                  # (TILE_B, INDIM)
    z2 = jnp.dot(h1.astype(jnp.bfloat16), w2_ref[...],
                 preferred_element_type=jnp.float32) + b2_ref[...]
    h2 = jnp.tanh(z2.astype(act_dtype))                                  # (TILE_B, INDIM)
    # Value head (64 -> 1): VPU multiply + XLU lane reduction instead of an
    # N=1 MXU matmul.  Head bias is a scalar read from SMEM.
    v = jnp.sum(h2.astype(jnp.float32) * wm_ref[...], axis=-1) + bm_ref[0, 0]   # (TILE_B,)
    out_ref[...] = v[None, :]                                            # lane-dense (1, TILE_B)


def _choose_tile(batch, max_tile):
    assert max_tile % 128 == 0
    b128 = _round_up(batch, 128)            # lane-aligned logical batch
    tile_b = min(max_tile, b128)
    # Keep >= 2 grid steps whenever there is enough work so the "parallel"
    # batch axis can shard across v7x's two TensorCores (harmless on 1-TC chips).
    if b128 >= 256:
        tile_b = min(tile_b, _round_up(b128 // 2, 128))
    assert tile_b % 128 == 0
    return tile_b


def categorical_critic_forward(obs, params, *, max_tile=8192, act_dtype=None):
    """obs: (B, OBS_DIM) float32 or bfloat16 -> value: (B,) float32 (matches .squeeze(-1))."""
    B, d = obs.shape
    assert d == OBS_DIM
    if act_dtype is None:
        act_dtype = jnp.bfloat16 if _bf16_elementwise_ok() else jnp.float32

    tile_b = _choose_tile(B, max_tile)
    num_tiles = pl.cdiv(B, tile_b)
    out_lanes = num_tiles * tile_b          # pad only the tiny output, never obs

    kernel = functools.partial(critic_kernel, act_dtype=act_dtype)
    f = pl.pallas_call(
        kernel,
        grid=(num_tiles,),
        in_specs=[
            pl.BlockSpec((tile_b, OBS_DIM), lambda i: (i, 0)),      # obs: streamed per tile (ragged tail OK)
            pl.BlockSpec((OBS_DIM, INDIM), lambda i: (0, 0)),       # w1: resident
            pl.BlockSpec((1, INDIM), lambda i: (0, 0)),             # b1: resident
            pl.BlockSpec((INDIM, INDIM), lambda i: (0, 0)),         # w2: resident
            pl.BlockSpec((1, INDIM), lambda i: (0, 0)),             # b2: resident
            pl.BlockSpec((1, INDIM), lambda i: (0, 0)),             # wm row: resident
            pl.BlockSpec(memory_space=pltpu.MemorySpace.SMEM),      # bm scalar in SMEM
        ],
        out_specs=pl.BlockSpec((1, tile_b), lambda i: (0, i)),      # lane-dense value slab
        out_shape=jax.ShapeDtypeStruct((1, out_lanes), jnp.float32),
        compiler_params=pltpu.CompilerParams(
            dimension_semantics=("parallel",),                      # megacore on v7x
        ),
    )
    v = f(
        obs,
        params["w1"], params["b1"],
        params["w2"], params["b2"],
        params["wm"], params["bm"],
    )
    return v[0, :B]  # .squeeze(-1); drops garbage lanes from the ragged last tile


# ---------------------------------------------------------------------------
# References
# ---------------------------------------------------------------------------
def reference_forward(obs, params, act_dtype):
    """Pure-JAX mirror of the kernel's numerical recipe (bf16 operands, f32 accum)."""
    z1 = jnp.dot(obs.astype(jnp.bfloat16), params["w1"],
                 preferred_element_type=jnp.float32) + params["b1"]
    h1 = jnp.tanh(z1.astype(act_dtype))
    z2 = jnp.dot(h1.astype(jnp.bfloat16), params["w2"],
                 preferred_element_type=jnp.float32) + params["b2"]
    h2 = jnp.tanh(z2.astype(act_dtype))
    return jnp.sum(h2.astype(jnp.float32) * params["wm"], axis=-1) + params["bm"][0, 0]


def reference_forward_f32(obs, params):
    """True-module (all-f32) semantics, used only as a loose sanity check."""
    w1 = params["w1"].astype(jnp.float32)
    w2 = params["w2"].astype(jnp.float32)
    h1 = jnp.tanh(jnp.dot(obs.astype(jnp.float32), w1) + params["b1"])
    h2 = jnp.tanh(jnp.dot(h1, w2) + params["b2"])
    return jnp.sum(h2 * params["wm"], axis=-1) + params["bm"][0, 0]


if __name__ == "__main__":
    params = make_params()
    act_dtype = jnp.bfloat16 if _bf16_elementwise_ok() else jnp.float32
    # bf16 tanh implementations may differ by ~1 ulp per element between the
    # kernel (EUP) and the XLA reference -> looser tolerance on that path.
    tol = 5e-2 if act_dtype == jnp.bfloat16 else 1e-3

    key = jax.random.PRNGKey(0)
    k1, k2 = jax.random.split(key)

    # Small f32 demo batch (single tile, ragged rows: 8 of 128).
    obs = jax.random.normal(k1, (BATCH, OBS_DIM), dtype=jnp.float32)
    out = jax.block_until_ready(
        categorical_critic_forward(obs, params, act_dtype=act_dtype))
    ref = reference_forward(obs, params, act_dtype)
    assert out.shape == (BATCH,)
    np.testing.assert_allclose(np.asarray(out), np.asarray(ref), rtol=tol, atol=tol)
    np.testing.assert_allclose(np.asarray(out),
                               np.asarray(reference_forward_f32(obs, params)),
                               rtol=1e-1, atol=1e-1)

    # bf16-ingested obs, multi-tile ragged path (grid of 3 tiles of 128, no pad copy).
    obs2 = jax.random.normal(jax.random.PRNGKey(1), (300, OBS_DIM),
                             dtype=jnp.float32).astype(jnp.bfloat16)
    out2 = jax.block_until_ready(
        categorical_critic_forward(obs2, params, max_tile=128, act_dtype=act_dtype))
    ref2 = reference_forward(obs2, params, act_dtype)
    assert out2.shape == (300,)
    np.testing.assert_allclose(np.asarray(out2), np.asarray(ref2), rtol=tol, atol=tol)

    print("KERNEL_OK")
</pallas_src>

<mosaic_0001>
module attributes {stable_mosaic.version = 11 : i64} {
  func.func @critic_kernel(%arg0: i32, %arg1: memref<128x16xf32, #tpu.memory_space<vmem>>, %arg2: memref<16x64xbf16, #tpu.memory_space<vmem>>, %arg3: memref<1x64xf32, #tpu.memory_space<vmem>>, %arg4: memref<64x64xbf16, #tpu.memory_space<vmem>>, %arg5: memref<1x64xf32, #tpu.memory_space<vmem>>, %arg6: memref<1x64xf32, #tpu.memory_space<vmem>>, %arg7: memref<1x1xf32, #tpu.memory_space<smem>>, %arg8: memref<1x128xf32, #tpu.memory_space<vmem>>) attributes {dimension_semantics = [#tpu.dimension_semantics<parallel>], iteration_bounds = array<i64: 1>, scalar_prefetch = 0 : i64, scratch_operands = 0 : i64, tpu.core_type = #tpu.core_type<tc>, window_params = [{transform_indices = @transform_0, window_bounds = array<i64: 128, 16>}, {pipeline_mode = #tpu.pipeline_mode<synchronous>, transform_indices = @transform_1, window_bounds = array<i64: 16, 64>}, {pipeline_mode = #tpu.pipeline_mode<synchronous>, transform_indices = @transform_2, window_bounds = array<i64: 1, 64>}, {pipeline_mode = #tpu.pipeline_mode<synchronous>, transform_indices = @transform_3, window_bounds = array<i64: 64, 64>}, {pipeline_mode = #tpu.pipeline_mode<synchronous>, transform_indices = @transform_4, window_bounds = array<i64: 1, 64>}, {pipeline_mode = #tpu.pipeline_mode<synchronous>, transform_indices = @transform_5, window_bounds = array<i64: 1, 64>}, {transform_indices = @transform_6, window_bounds = array<i64: 1, 1>}, {transform_indices = @transform_7, window_bounds = array<i64: 1, 128>}]} {
    %c0 = arith.constant 0 : index
    %c0_0 = arith.constant 0 : index
    %0 = vector.load %arg1[%c0, %c0_0] : memref<128x16xf32, #tpu.memory_space<vmem>>, vector<128x16xf32>
    %1 = arith.truncf %0 : vector<128x16xf32> to vector<128x16xbf16>
    %c0_1 = arith.constant 0 : index
    %c0_2 = arith.constant 0 : index
    %2 = vector.load %arg2[%c0_1, %c0_2] : memref<16x64xbf16, #tpu.memory_space<vmem>>, vector<16x64xbf16>
    %cst = arith.constant dense<0.000000e+00> : vector<128x64xf32>
    %3 = tpu.matmul %1, %2, %cst {dimension_numbers = #tpu.dot_dimension_numbers<[1], [0], [0], [1], [0, 0, 1, 1], [], []>} : vector<128x16xbf16>, vector<16x64xbf16>, vector<128x64xf32> -> vector<128x64xf32>
    %c0_3 = arith.constant 0 : index
    %c0_4 = arith.constant 0 : index
    %4 = vector.load %arg3[%c0_3, %c0_4] : memref<1x64xf32, #tpu.memory_space<vmem>>, vector<1x64xf32>
    %5 = vector.broadcast %4 : vector<1x64xf32> to vector<128x64xf32>
    %6 = arith.addf %3, %5 : vector<128x64xf32>
    %7 = math.tanh %6 : vector<128x64xf32>
    %8 = arith.truncf %7 : vector<128x64xf32> to vector<128x64xbf16>
    %c0_5 = arith.constant 0 : index
    %c0_6 = arith.constant 0 : index
    %9 = vector.load %arg4[%c0_5, %c0_6] : memref<64x64xbf16, #tpu.memory_space<vmem>>, vector<64x64xbf16>
    %cst_7 = arith.constant dense<0.000000e+00> : vector<128x64xf32>
    %10 = tpu.matmul %8, %9, %cst_7 {dimension_numbers = #tpu.dot_dimension_numbers<[1], [0], [0], [1], [0, 0, 1, 1], [], []>} : vector<128x64xbf16>, vector<64x64xbf16>, vector<128x64xf32> -> vector<128x64xf32>
    %c0_8 = arith.constant 0 : index
    %c0_9 = arith.constant 0 : index
    %11 = vector.load %arg5[%c0_8, %c0_9] : memref<1x64xf32, #tpu.memory_space<vmem>>, vector<1x64xf32>
    %12 = vector.broadcast %11 : vector<1x64xf32> to vector<128x64xf32>
    %13 = arith.addf %10, %12 : vector<128x64xf32>
    %14 = math.tanh %13 : vector<128x64xf32>
    %c0_10 = arith.constant 0 : index
    %c0_11 = arith.constant 0 : index
    %15 = vector.load %arg6[%c0_10, %c0_11] : memref<1x64xf32, #tpu.memory_space<vmem>>, vector<1x64xf32>
    %16 = vector.broadcast %15 : vector<1x64xf32> to vector<128x64xf32>
    %17 = arith.mulf %14, %16 : vector<128x64xf32>
    %cst_12 = arith.constant dense<0.000000e+00> : vector<128xf32>
    %18 = vector.multi_reduction <add>, %17, %cst_12 [1] : vector<128x64xf32> to vector<128xf32>
    %c0_13 = arith.constant 0 : index
    %c0_14 = arith.constant 0 : index
    %19 = memref.load %arg7[%c0_13, %c0_14] : memref<1x1xf32, #tpu.memory_space<smem>>
    %20 = vector.broadcast %19 : f32 to vector<128xf32>
    %21 = arith.addf %18, %20 : vector<128xf32>
    %22 = vector.shape_cast %21 : vector<128xf32> to vector<1x128xf32>
    %c0_15 = arith.constant 0 : index
    %c0_16 = arith.constant 0 : index
    %23 = vector.load %arg8[%c0_15, %c0_16] : memref<1x128xf32, #tpu.memory_space<vmem>>, vector<1x128xf32>
    tpu.vector_store %arg8[%c0_15, %c0_16], %22 {strides = array<i32>} : memref<1x128xf32, #tpu.memory_space<vmem>>, vector<1x128xf32>,
    return
  }
  func.func @transform_0(%arg0: i32) -> (i32, i32) {
    %c0_i32 = arith.constant 0 : i32
    %c0_i32_0 = arith.constant 0 : i32
    return %arg0, %c0_i32 : i32, i32
  }
  func.func @transform_1(%arg0: i32) -> (i32, i32) {
    %c0_i32 = arith.constant 0 : i32
    %c0_i32_0 = arith.constant 0 : i32
    %c0_i32_1 = arith.constant 0 : i32
    return %c0_i32, %c0_i32_0 : i32, i32
  }
  func.func @transform_2(%arg0: i32) -> (i32, i32) {
    %c0_i32 = arith.constant 0 : i32
    %c0_i32_0 = arith.constant 0 : i32
    %c0_i32_1 = arith.constant 0 : i32
    return %c0_i32, %c0_i32_0 : i32, i32
  }
  func.func @transform_3(%arg0: i32) -> (i32, i32) {
    %c0_i32 = arith.constant 0 : i32
    %c0_i32_0 = arith.constant 0 : i32
    %c0_i32_1 = arith.constant 0 : i32
    return %c0_i32, %c0_i32_0 : i32, i32
  }
  func.func @transform_4(%arg0: i32) -> (i32, i32) {
    %c0_i32 = arith.constant 0 : i32
    %c0_i32_0 = arith.constant 0 : i32
    %c0_i32_1 = arith.constant 0 : i32
    return %c0_i32, %c0_i32_0 : i32, i32
  }
  func.func @transform_5(%arg0: i32) -> (i32, i32) {
    %c0_i32 = arith.constant 0 : i32
    %c0_i32_0 = arith.constant 0 : i32
    %c0_i32_1 = arith.constant 0 : i32
    return %c0_i32, %c0_i32_0 : i32, i32
  }
  func.func @transform_6(%arg0: i32) -> (i32, i32) {
    %c0_i32 = arith.constant 0 : i32
    %c0_i32_0 = arith.constant 0 : i32
    %c0_i32_1 = arith.constant 0 : i32
    return %c0_i32, %c0_i32_0 : i32, i32
  }
  func.func @transform_7(%arg0: i32) -> (i32, i32) {
    %c0_i32 = arith.constant 0 : i32
    %c0_i32_0 = arith.constant 0 : i32
    return %c0_i32, %arg0 : i32, i32
  }
}

</mosaic_0001>

<bundles_post_ra>
// kernel: tpu_custom_call.1
= control target key start
LH: loop header
LB: loop body
LE: loop exit
PB: predicated region body
PF: predicated region fallthrough
CT: control target
= control target key end

     0   :  { %13 = vsyncpa [#allocation4], 0  ;;  %s1116_s0 = inlined_call_operand.hbm [shape: f32[8,16], index: 0, kind: input, shape index: {}]   ;;  %s1117_s1 = inlined_call_operand.hbm [shape: bf16[16,64], index: 1, kind: input, shape index: {}]   ;;  %s1118_s2 = inlined_call_operand.vmem [shape: f32[1,64], index: 2, kind: input, shape index: {}]   ;;  %s1119_s3 = inlined_call_operand.hbm [shape: bf16[64,64], index: 3, kind: input, shape index: {}]   ;;  %s1120_s4 = inlined_call_operand.vmem [shape: f32[1,64], index: 4, kind: input, shape index: {}]   ;;  %s1121_s5 = inlined_call_operand.vmem [shape: f32[1,64], index: 5, kind: input, shape index: {}]   ;;  %s1122_s6 = inlined_call_operand.<no memory space> [shape: f32[1,1], index: 6, kind: input, shape index: {}]   ;;  %s1123_s7 = inlined_call_operand.hbm [shape: f32[1,128], index: 7, kind: output, shape index: {}]  }
   0x1   :  { %14 = vsyncpa [#allocation7], 0 }
   0x2   :  { %15 = vsyncpa [#allocation5], 0 }
   0x3   :  { %20 = vsyncadd [#allocation4], 1920  ;;  %s916_s24 = smov [#allocation6]  }
   0x4   :  { %s33_s25 = sshll.u32 %s916_s24, 4  ;;  %s34_s25 = int_to_ptr.vmem [resolvable:$true] %s33_s25 }
   0x5   :  { %s838_s26 = scalar_lea.vmem %s34_s25, 128  ;;  %p843_p1 = scmp.lt.s32.totalorder %s34_s25, %s34_s25 }
   0x6   :  { %p839_p0 = scmp.ne.s32.totalorder %s34_s25, %s838_s26  ;;  %p844_p2 = scmp.lt.s32.totalorder %s838_s26, %s838_s26 }
   0x8   :  { %p845_p3 = por %p844_p2, %p843_p1 }
   0xa   :  { %p846_p4 = pnand %p845_p3, %p839_p0 }
   0xc   :  { %849 = shalt.err (!%p846_p4)
}
   0xd   :  { %s917_s27 = smov 64   ;;  %s918_s28 = smov 4  }
   0xe   :  { %39 = dma.hbm_to_vmem [thread:$0]  %s1117_s1, 128, %s34_s25, [#allocation7], %s917_s27, %s917_s27, %s918_s28  }
   0xf   :  { %s919_s8 = smov [#allocation3]  }
  0x10   :  { %s21_s9 = sshll.u32 %s919_s8, 4  ;;  %s22_s9 = int_to_ptr.vmem [resolvable:$true] %s21_s9 }
  0x11   :  { %s858_s10 = scalar_lea.vmem %s22_s9, 128  ;;  %s862_s11 = scalar_lea.vmem %s22_s9, 2048 }
  0x12   :  { %p859_p5 = scmp.ne.s32.totalorder %s22_s9, %s858_s10  ;;  %p863_p6 = scmp.lt.s32.totalorder %s22_s9, %s22_s9 }
  0x13   :  { %p864_p7 = scmp.lt.s32.totalorder %s862_s11, %s858_s10 }
  0x15   :  { %p865_p8 = por %p864_p7, %p863_p6 }
  0x17   :  { %p866_p9 = pnand %p865_p8, %p859_p5 }
  0x19   :  { %869 = shalt.err (!%p866_p9)
}
  0x1a   :  { %s920_s12 = smov 128   ;;  %s921_s13 = smov 8  }
  0x1b   :  { %27 = dma.hbm_to_vmem [thread:$0]  %s1116_s0, 128, %s22_s9, [#allocation4], %s920_s12, %s920_s12, %s921_s13  }
  0x1c   :  { %s922_s16 = smov [#allocation8]  }
  0x1d   :  { %s47_s17 = sshll.u32 %s922_s16, 4  ;;  %s48_s17 = int_to_ptr.vmem [resolvable:$true] %s47_s17 }
  0x1e   :  { %s878_s1 = scalar_lea.vmem %s48_s17, 512  ;;  %p883_p11 = scmp.lt.s32.totalorder %s48_s17, %s48_s17 }
  0x1f   :  { %p879_p10 = scmp.ne.s32.totalorder %s48_s17, %s878_s1  ;;  %p884_p12 = scmp.lt.s32.totalorder %s878_s1, %s878_s1 }
  0x21   :  { %p885_p13 = por %p884_p12, %p883_p11 }
  0x23   :  { %p886_p0 = pnand %p885_p13, %p879_p10 }
  0x25   :  { %889 = shalt.err (!%p886_p0)
}
  0x26   :  { %53 = dma.hbm_to_vmem [thread:$0]  %s1119_s3, 512, %s48_s17, [#allocation7], %s917_s27, %s917_s27, %s918_s28  }
  0x27   :  { %910 = dma.done.wait [#allocation4], 2048  }
  0x28   :  { %911 = vsyncadd [#allocation4], 4294965248 }
  0x29   :  { %912 = dma.done.wait [#allocation7], 640  }
  0x2a   :  { %913 = vsyncadd [#allocation7], 4294966656  ;;  %v761_v0 = vld [vmem:[#allocation6] sm:$0xff]   ;;  %v71_v2 = vld [vmem:[#allocation3 + $0x8] sm:$0xff]  ;;  %vm109_vm0 = vcmask 130048   ;;  %vm294_vm1 = vcmask 523264  }
  0x2b   :  { %v70_v1 = vld [vmem:[#allocation3] sm:$0xff]  ;;  %v72_v3 = vld [vmem:[#allocation3 + $0x10] sm:$0xff]  ;;  %711 = vmatprep.subr.bf16.mxu0 %v761_v0  ;;  %v73_v5 = vld [vmem:[#allocation3 + $0x18] sm:$0xff]  ;;  %vm548_vm2 = vcmask 130112   ;;  %vm555_vm3 = vcmask 195712   ;;  %vm562_vm4 = vcmask 261312  }
  0x2c   :  { %v86_v4 = vpack.c.bf16 %v71_v2, %v70_v1  ;;  %v74_v6 = vld [vmem:[#allocation3 + $0x20] sm:$0xff]  ;;  %v75_v7 = vld [vmem:[#allocation3 + $0x28] sm:$0xff]  ;;  %712 = vmatpush3.bf16.msra.mxu0 %v761_v0  ;;  %v87_v8 = vpack.c.bf16 %v73_v5, %v72_v3  ;;  %v76_v10 = vld [vmem:[#allocation3 + $0x30] sm:$0xff]  ;;  %vm569_vm5 = vcmask 326912   ;;  %vm576_vm6 = vcmask 392512  }
  0x2d   :  { %v88_v9 = vpack.c.bf16 %v75_v7, %v74_v6  ;;  %v77_v11 = vld [vmem:[#allocation3 + $0x38] sm:$0xff]  ;;  %v78_v12 = vld [vmem:[#allocation3 + $0x40] sm:$0xff]  ;;  %v79_v13 = vld [vmem:[#allocation3 + $0x48] sm:$0xff]  ;;  %vm583_vm7 = vcmask 458112   ;;  %vm590_vm8 = vcmask 523712   ;;  %vm597_vm9 = vcmask 589312  }
  0x2e   :  { %713 = vmatprep.mubr.msk.bf16.mxu0 %vm109_vm0, %v86_v4  ;;  %v89_v14 = vpack.c.bf16 %v77_v11, %v76_v10  ;;  %v90_v15 = vpack.c.bf16 %v79_v13, %v78_v12  ;;  %v80_v16 = vld [vmem:[#allocation3 + $0x50] sm:$0xff]  ;;  %v81_v17 = vld [vmem:[#allocation3 + $0x58] sm:$0xff]  ;;  %v82_v18 = vld [vmem:[#allocation3 + $0x60] sm:$0xff]  ;;  %vm604_vm10 = vcmask 654912   ;;  %vm611_vm11 = vcmask 720512  }
  0x2f   :  { %714 = vmatmul.mubr.msk.bf16.vlgmr.msra.gmra.mxu0 %vm109_vm0, %v87_v8  ;;  %v83_v19 = vld [vmem:[#allocation3 + $0x68] sm:$0xff]  ;;  %v91_v20 = vpack.c.bf16 %v81_v17, %v80_v16  ;;  %v84_v22 = vld [vmem:[#allocation3 + $0x70] sm:$0xff]  ;;  %v85_v23 = vld [vmem:[#allocation3 + $0x78] sm:$0xff]  ;;  %vm618_vm12 = vcmask 786112   ;;  %vm625_vm13 = vcmask 851712   ;;  %vm632_vm14 = vcmask 917312  }
  0x30   :  { %717 = vmatprep.mubr.msk.bf16.mxu0 %vm109_vm0, %v88_v9  ;;  %v92_v21 = vpack.c.bf16 %v83_v19, %v82_v18  ;;  %v93_v24 = vpack.c.bf16 %v85_v23, %v84_v22  ;;  %v762_v25 = vld [vmem:[#allocation8 + $0x18] sm:$0xff]   ;;  %v763_v26 = vld [vmem:[#allocation8 + $0x10] sm:$0xff]   ;;  %v764_v27 = vld [vmem:[#allocation8 + $0x8] sm:$0xff]   ;;  %vm639_vm15 = vcmask 982912  }
  0x31   :  { %729 = vmatprep.subr.bf16.mxu1 %v762_v25  ;;  %v765_v28 = vld [vmem:[#allocation8] sm:$0xff]   ;;  %v666_v30 = vld [vmem:[%s1118_s2] ss:$0 sm:$0xff] }
  0x32   :  { %730 = vmatpush3.bf16.msra.mxu1 %v762_v25  ;;  %v1001_v22 = vld [vmem:[%s1120_s4] ss:$0 sm:$0xff] }
  0x33   :  { %731 = vmatprep.subr.bf16.mxu1 %v763_v26 }
  0x36   :  { %732 = vmatpush3.bf16.msra.mxu1 %v763_v26 }
  0x37   :  { %718 = vmatmul.mubr.msk.bf16.gmra.mxu0 %vm109_vm0, %v89_v14  ;;  %733 = vmatprep.subr.bf16.mxu1 %v764_v27 }
  0x38   :  { %721 = vmatprep.mubr.msk.bf16.mxu0 %vm109_vm0, %v90_v15 }
  0x3a   :  { %734 = vmatpush3.bf16.msra.mxu1 %v764_v27 }
  0x3b   :  { %735 = vmatprep.subr.bf16.mxu1 %v765_v28 }
  0x3e   :  { %736 = vmatpush3.bf16.msra.mxu1 %v765_v28 }
  0x3f   :  { %722 = vmatmul.mubr.msk.bf16.gmra.mxu0 %vm109_vm0, %v91_v20 }
  0x40   :  { %725 = vmatprep.mubr.msk.bf16.mxu0 %vm109_vm0, %v92_v21 }
  0x47   :  { %726 = vmatmul.mubr.msk.bf16.gmra.mxu0 %vm109_vm0, %v93_v24  ;;  %vm646_vm0 = vcmask 1048512  }
  0xef   :  { %v715_v29 = vpop.f32.mrf.mxu0 }
  0xf0   :  { %v177_v35 = vadd.f32 %v715_v29, %v666_v30 }
  0xf1   :  { %v168_v31 = vpop.f32.mrf.mxu0 }
  0xf2   :  { %v169_v32 = vadd.f32 %v666_v30, %v168_v31 }
  0xf3   :  { %v716_v33 = vpop.f32.mrf.mxu0 }
  0xf4   :  { %v180_v34 = vadd.f32 %v716_v33, %v666_v30  ;;  %766 = vtanh.f32 %v169_v32 }
  0xf5   :  { %v171_v36 = vpop.f32.mrf.mxu0 }
  0xf6   :  { %v172_v37 = vadd.f32 %v666_v30, %v171_v36  ;;  %768 = vtanh.f32 %v180_v34 }
  0xf7   :  { %v719_v38 = vpop.f32.mrf.mxu0 }
  0xf8   :  { %770 = vtanh.f32 %v172_v37  ;;  %v193_v43 = vadd.f32 %v719_v38, %v666_v30  ;;  %v1013_v38 = vld [vmem:[%s1121_s5] ss:$0 sm:$0xff] }
  0xf9   :  { %772 = vtanh.f32 %v177_v35  ;;  %v184_v39 = vpop.f32.mrf.mxu0 }
  0xfa   :  { %v185_v40 = vadd.f32 %v666_v30, %v184_v39 }
  0xfb   :  { %v720_v41 = vpop.f32.mrf.mxu0 }
  0xfc   :  { %v196_v42 = vadd.f32 %v720_v41, %v666_v30  ;;  %774 = vtanh.f32 %v185_v40 }
  0xfd   :  { %v187_v44 = vpop.f32.mrf.mxu0 }
  0xfe   :  { %v188_v45 = vadd.f32 %v666_v30, %v187_v44  ;;  %776 = vtanh.f32 %v196_v42 }
  0xff   :  { %v723_v46 = vpop.f32.mrf.mxu0 }
 0x100   :  { %778 = vtanh.f32 %v188_v45  ;;  %v209_v54 = vadd.f32 %v723_v46, %v666_v30 }
 0x101   :  { %780 = vtanh.f32 %v193_v43  ;;  %v200_v47 = vpop.f32.mrf.mxu0  ;;  %v767_v49 = vpop.eup %766 }
 0x102   :  { %v201_v48 = vadd.f32 %v666_v30, %v200_v47 }
 0x103   :  { %v724_v50 = vpop.f32.mrf.mxu0  ;;  %v769_v51 = vpop.eup %768 }
 0x104   :  { %v212_v52 = vadd.f32 %v724_v50, %v666_v30  ;;  %782 = vtanh.f32 %v201_v48 }
 0x105   :  { %v771_v53 = vpop.eup %770  ;;  %v203_v55 = vpop.f32.mrf.mxu0 }
 0x106   :  { %v773_v56 = vpop.eup %772  ;;  %v204_v57 = vadd.f32 %v666_v30, %v203_v55  ;;  %v247_v58 = vpack.c.bf16 %v771_v53, %v767_v49  ;;  %784 = vtanh.f32 %v212_v52 }
 0x107   :  { %v727_v59 = vpop.f32.mrf.mxu0  ;;  %v248_v60 = vpack.c.bf16 %v769_v51, %v773_v56 }
 0x108   :  { %786 = vtanh.f32 %v204_v57  ;;  %737 = vmatprep.mubr.msk.bf16.mxu1 %vm294_vm1, %v247_v58  ;;  %v225_v4 = vadd.f32 %v727_v59, %v666_v30 }
 0x109   :  { %788 = vtanh.f32 %v209_v54  ;;  %v216_v61 = vpop.f32.mrf.mxu0  ;;  %738 = vmatmul.mubr.msk.bf16.vlgmr.msra.gmra.mxu1 %vm294_vm1, %v248_v60  ;;  %v775_v63 = vpop.eup %774 }
 0x10a   :  { %v217_v62 = vadd.f32 %v666_v30, %v216_v61 }
 0x10b   :  { %v728_v0 = vpop.f32.mrf.mxu0  ;;  %v777_v1 = vpop.eup %776 }
 0x10c   :  { %v228_v2 = vadd.f32 %v728_v0, %v666_v30  ;;  %790 = vtanh.f32 %v217_v62 }
 0x10d   :  { %v779_v3 = vpop.eup %778  ;;  %v219_v5 = vpop.f32.mrf.mxu0 }
 0x10e   :  { %v781_v6 = vpop.eup %780  ;;  %v220_v7 = vadd.f32 %v666_v30, %v219_v5  ;;  %v249_v8 = vpack.c.bf16 %v779_v3, %v775_v63  ;;  %792 = vtanh.f32 %v228_v2 }
 0x10f   :  { %v250_v9 = vpack.c.bf16 %v777_v1, %v781_v6 }
 0x110   :  { %794 = vtanh.f32 %v220_v7  ;;  %741 = vmatprep.mubr.msk.bf16.mxu1 %vm294_vm1, %v249_v8 }
 0x111   :  { %796 = vtanh.f32 %v225_v4  ;;  %742 = vmatmul.mubr.msk.bf16.gmra.mxu1 %vm294_vm1, %v250_v9  ;;  %v783_v10 = vpop.eup %782 }
 0x113   :  { %v785_v11 = vpop.eup %784 }
 0x115   :  { %v787_v12 = vpop.eup %786 }
 0x116   :  { %v789_v13 = vpop.eup %788  ;;  %v251_v14 = vpack.c.bf16 %v787_v12, %v783_v10 }
 0x117   :  { %v252_v15 = vpack.c.bf16 %v785_v11, %v789_v13 }
 0x118   :  { %745 = vmatprep.mubr.msk.bf16.mxu1 %vm294_vm1, %v251_v14 }
 0x119   :  { %746 = vmatmul.mubr.msk.bf16.gmra.mxu1 %vm294_vm1, %v252_v15  ;;  %v791_v16 = vpop.eup %790 }
 0x11b   :  { %v793_v17 = vpop.eup %792 }
 0x11d   :  { %v795_v18 = vpop.eup %794 }
 0x11e   :  { %v797_v19 = vpop.eup %796  ;;  %v253_v20 = vpack.c.bf16 %v795_v18, %v791_v16 }
 0x11f   :  { %v254_v21 = vpack.c.bf16 %v793_v17, %v797_v19 }
 0x120   :  { %749 = vmatprep.mubr.msk.bf16.mxu1 %vm294_vm1, %v253_v20 }
 0x121   :  { %750 = vmatmul.mubr.msk.bf16.gmra.mxu1 %vm294_vm1, %v254_v21 }
 0x1c9   :  { %v739_v23 = vpop.f32.mrf.mxu1 }
 0x1ca   :  { %v362_v24 = vadd.f32 %v739_v23, %v1001_v22 }
 0x1cb   :  { %v353_v25 = vpop.f32.mrf.mxu1 }
 0x1cc   :  { %798 = vtanh.f32 %v362_v24  ;;  %v354_v26 = vadd.f32 %v1001_v22, %v353_v25 }
 0x1cd   :  { %v740_v27 = vpop.f32.mrf.mxu1 }
 0x1ce   :  { %800 = vtanh.f32 %v354_v26  ;;  %v365_v28 = vadd.f32 %v740_v27, %v1001_v22 }
 0x1cf   :  { %v356_v29 = vpop.f32.mrf.mxu1 }
 0x1d0   :  { %802 = vtanh.f32 %v365_v28  ;;  %v357_v30 = vadd.f32 %v1001_v22, %v356_v29 }
 0x1d1   :  { %v743_v31 = vpop.f32.mrf.mxu1 }
 0x1d2   :  { %804 = vtanh.f32 %v357_v30  ;;  %v378_v32 = vadd.f32 %v743_v31, %v1001_v22 }
 0x1d3   :  { %v369_v33 = vpop.f32.mrf.mxu1 }
 0x1d4   :  { %806 = vtanh.f32 %v378_v32  ;;  %v370_v34 = vadd.f32 %v1001_v22, %v369_v33 }
 0x1d5   :  { %v744_v35 = vpop.f32.mrf.mxu1 }
 0x1d6   :  { %808 = vtanh.f32 %v370_v34  ;;  %v381_v36 = vadd.f32 %v744_v35, %v1001_v22 }
 0x1d7   :  { %v372_v37 = vpop.f32.mrf.mxu1 }
 0x1d8   :  { %810 = vtanh.f32 %v381_v36  ;;  %v373_v39 = vadd.f32 %v1001_v22, %v372_v37 }
 0x1d9   :  { %v799_v40 = vpop.eup %798  ;;  %v747_v41 = vpop.f32.mrf.mxu1 }
 0x1da   :  { %812 = vtanh.f32 %v373_v39  ;;  %v394_v42 = vadd.f32 %v747_v41, %v1001_v22  ;;  %v441_v43 = vmul.f32 %v799_v40, %v1013_v38  ;;  %v537_v41 = vlaneseq }
 0x1db   :  { %v801_v44 = vpop.eup %800  ;;  %v385_v45 = vpop.f32.mrf.mxu1 }
 0x1dc   :  { %814 = vtanh.f32 %v394_v42  ;;  %v386_v46 = vadd.f32 %v1001_v22, %v385_v45  ;;  %v461_v47 = vsel %vm294_vm1, %v441_v43, 0.0  ;;  %v439_v48 = vmul.f32 %v801_v44, %v1013_v38 }
 0x1dd   :  { %v803_v49 = vpop.eup %802  ;;  %462 = vadd.xlane.f32.xlu1 %v461_v47  ;;  %v748_v50 = vpop.f32.mrf.mxu1  ;;  %v1056_v42 = vand.u32 127, %v537_v41 }
 0x1de   :  { %816 = vtanh.f32 %v386_v46  ;;  %v397_v51 = vadd.f32 %v748_v50, %v1001_v22  ;;  %v455_v52 = vsel %vm294_vm1, %v439_v48, 0.0  ;;  %v442_v53 = vmul.f32 %v803_v49, %v1013_v38 }
 0x1df   :  { %v805_v54 = vpop.eup %804  ;;  %v388_v55 = vpop.f32.mrf.mxu1  ;;  %456 = vadd.xlane.f32.xlu0 %v455_v52  ;;  %v543_v43 = vadd.s32 4294967288, %v1056_v42  ;;  %v1059_v46 = vshrl.u32 %v537_v41, 7  ;;  %v550_v47 = vadd.s32 4294967280, %v1056_v42  ;;  %v557_v52 = vadd.s32 4294967272, %v1056_v42 }
 0x1e0   :  { %818 = vtanh.f32 %v397_v51  ;;  %v389_v56 = vadd.f32 %v1001_v22, %v388_v55  ;;  %v464_v57 = vsel %vm294_vm1, %v442_v53, 0.0  ;;  %v440_v58 = vmul.f32 %v805_v54, %v1013_v38 }
 0x1e1   :  { %v807_v59 = vpop.eup %806  ;;  %465 = vadd.xlane.f32.xlu1 %v464_v57  ;;  %v751_v60 = vpop.f32.mrf.mxu1  ;;  %v546_v48 = vsub.s32 %v543_v43, %v1059_v46  ;;  %v541_v49 = vsub.s32 %v1056_v42, %v1059_v46  ;;  %v553_v54 = vsub.s32 %v550_v47, %v1059_v46 }
 0x1e2   :  { %820 = vtanh.f32 %v389_v56  ;;  %v410_v61 = vadd.f32 %v751_v60, %v1001_v22  ;;  %v458_v62 = vsel %vm294_vm1, %v440_v58, 0.0  ;;  %v445_v63 = vmul.f32 %v807_v59, %v1013_v38 }
 0x1e3   :  { %v809_v0 = vpop.eup %808  ;;  %v401_v1 = vpop.f32.mrf.mxu1  ;;  %459 = vadd.xlane.f32.xlu0 %v458_v62  ;;  %v564_v58 = vadd.s32 4294967264, %v1056_v42  ;;  %v571_v62 = vadd.s32 4294967256, %v1056_v42 }
 0x1e4   :  { %v402_v2 = vadd.f32 %v1001_v22, %v401_v1  ;;  %822 = vtanh.f32 %v410_v61  ;;  %v473_v5 = vsel %vm294_vm1, %v445_v63, 0.0  ;;  %v443_v8 = vmul.f32 %v809_v0, %v1013_v38 }
 0x1e5   :  { %v811_v3 = vpop.eup %810  ;;  %v752_v4 = vpop.f32.mrf.mxu1  ;;  %v560_v61 = vsub.s32 %v557_v52, %v1059_v46  ;;  %v578_v1 = vadd.s32 4294967248, %v1056_v42 }
 0x1e6   :  { %824 = vtanh.f32 %v402_v2  ;;  %v413_v6 = vadd.f32 %v752_v4, %v1001_v22  ;;  %v446_v7 = vmul.f32 %v811_v3, %v1013_v38  ;;  %v467_v15 = vsel %vm294_vm1, %v443_v8, 0.0 }
 0x1e7   :  { %v813_v9 = vpop.eup %812  ;;  %v404_v10 = vpop.f32.mrf.mxu1  ;;  %474 = vadd.xlane.f32.xlu0 %v473_v5  ;;  %v567_v4 = vsub.s32 %v564_v58, %v1059_v46  ;;  %v574_v8 = vsub.s32 %v571_v62, %v1059_v46  ;;  %v641_v58 = vadd.s32 4294967176, %v1056_v42 }
 0x1e8   :  { %v405_v11 = vadd.f32 %v1001_v22, %v404_v10  ;;  %v476_v12 = vsel %vm294_vm1, %v446_v7, 0.0  ;;  %v444_v13 = vmul.f32 %v813_v9, %v1013_v38  ;;  %826 = vtanh.f32 %v413_v6 }
 0x1e9   :  { %v815_v14 = vpop.eup %814  ;;  %477 = vadd.xlane.f32.xlu1 %v476_v12  ;;  %v581_v10 = vsub.s32 %v578_v1, %v1059_v46 }
 0x1ea   :  { %828 = vtanh.f32 %v405_v11  ;;  %v449_v16 = vmul.f32 %v815_v14, %v1013_v38  ;;  %v470_v18 = vsel %vm294_vm1, %v444_v13, 0.0  ;;  %v585_v11 = vadd.s32 4294967240, %v1056_v42 }
 0x1eb   :  { %v817_v17 = vpop.eup %816  ;;  %468 = vadd.xlane.f32.xlu0 %v467_v15 }
 0x1ec   :  { %v485_v20 = vsel %vm294_vm1, %v449_v16, 0.0  ;;  %v447_v22 = vmul.f32 %v817_v17, %v1013_v38  ;;  %v592_v16 = vadd.s32 4294967232, %v1056_v42 }
 0x1ed   :  { %v819_v19 = vpop.eup %818  ;;  %471 = vadd.xlane.f32.xlu1 %v470_v18  ;;  %v606_v18 = vadd.s32 4294967216, %v1056_v42 }
 0x1ee   :  { %v450_v21 = vmul.f32 %v819_v19, %v1013_v38  ;;  %v479_v27 = vsel %vm294_vm1, %v447_v22, 0.0  ;;  %v599_v22 = vadd.s32 4294967224, %v1056_v42 }
 0x1ef   :  { %v821_v23 = vpop.eup %820  ;;  %486 = vadd.xlane.f32.xlu0 %v485_v20 }
 0x1f0   :  { %v488_v24 = vsel %vm294_vm1, %v450_v21, 0.0  ;;  %v448_v25 = vmul.f32 %v821_v23, %v1013_v38  ;;  %v588_v23 = vsub.s32 %v585_v11, %v1059_v46 }
 0x1f1   :  { %489 = vadd.xlane.f32.xlu1 %v488_v24  ;;  %v823_v26 = vpop.eup %822 }
 0x1f2   :  { %v482_v29 = vsel %vm294_vm1, %v448_v25, 0.0  ;;  %v453_v33 = vmul.f32 %v823_v26, %v1013_v38  ;;  %v613_v25 = vadd.s32 4294967208, %v1056_v42 }
 0x1f3   :  { %v825_v28 = vpop.eup %824  ;;  %480 = vadd.xlane.f32.xlu0 %v479_v27 }
 0x1f4   :  { %v451_v30 = vmul.f32 %v825_v28, %v1013_v38  ;;  %v497_v37 = vsel %vm294_vm1, %v453_v33, 0.0 }
 0x1f5   :  { %483 = vadd.xlane.f32.xlu1 %v482_v29  ;;  %v827_v31 = vpop.eup %826  ;;  %v595_v29 = vsub.s32 %v592_v16, %v1059_v46 }
 0x1f6   :  { %v491_v32 = vsel %vm294_vm1, %v451_v30, 0.0  ;;  %v454_v39 = vmul.f32 %v827_v31, %v1013_v38  ;;  %v609_v30 = vsub.s32 %v606_v18, %v1059_v46 }
 0x1f7   :  { %v829_v34 = vpop.eup %828  ;;  %492 = vadd.xlane.f32.xlu0 %v491_v32  ;;  %v620_v32 = vadd.s32 4294967200, %v1056_v42 }
 0x1f8   :  { %v452_v35 = vmul.f32 %v829_v34, %v1013_v38  ;;  %v500_v40 = vsel %vm294_vm1, %v454_v39, 0.0  ;;  %v1065_v38 = vstv %s1122_s6  ;;  %v616_v39 = vsub.s32 %v613_v25, %v1059_v46  ;;  %s923_s6 = smov [#allocation9]  }
 0x1f9   :  { %s656_s23 = sshll.u32 %s923_s6, 4  ;;  %s657_s23 = int_to_ptr.vmem [resolvable:$true] %s656_s23 }
 0x1fa   :  { %v494_v36 = vsel %vm294_vm1, %v452_v35, 0.0  ;;  %v602_v35 = vsub.s32 %v599_v22, %v1059_v46  ;;  %s890_s24 = scalar_lea.vmem %s657_s23, 16  ;;  %s894_s25 = scalar_lea.vmem %s657_s23, 32 }
 0x1fb   :  { %495 = vadd.xlane.f32.xlu1 %v494_v36  ;;  %498 = vadd.xlane.f32.xlu0 %v497_v37  ;;  %p891_p1 = scmp.ne.s32.totalorder %s657_s23, %s890_s24  ;;  %p895_p2 = scmp.lt.s32.totalorder %s657_s23, %s657_s23 }
 0x1fc   :  { %p896_p3 = scmp.lt.s32.totalorder %s894_s25, %s890_s24 }
 0x1fe   :  { %p897_p4 = por %p896_p3, %p895_p2 }
 0x1ff   :  { %501 = vadd.xlane.f32.xlu1 %v500_v40 }
 0x200   :  { %p898_p5 = pnand %p897_p4, %p891_p1 }
 0x266   :  { %v463_v44 = vpop.xlane.xlu1 %462 }
 0x267   :  { %v507_v56 = vadd.f32 %v1065_v38, %v463_v44 }
 0x268   :  { %v457_v45 = vpop.xlane.xlu0 %456 }
 0x269   :  { %v505_v50 = vadd.f32 %v1065_v38, %v457_v45  ;;  %v554_v3 = vrot.slane %v507_v56, %v553_v54  ;;  %v627_v45 = vadd.s32 4294967192, %v1056_v42 }
 0x26a   :  { %v466_v55 = vpop.xlane.xlu1 %465 }
 0x26b   :  { %v542_v59 = vrot.slane %v505_v50, %v541_v49  ;;  %v508_v63 = vadd.f32 %v1065_v38, %v466_v55  ;;  %v634_v50 = vadd.s32 4294967184, %v1056_v42 }
 0x26c   :  { %v460_v51 = vpop.xlane.xlu0 %459 }
 0x26d   :  { %v506_v53 = vadd.f32 %v1065_v38, %v460_v51  ;;  %v561_v9 = vrot.slane %v508_v63, %v560_v61  ;;  %v637_v62 = vsub.s32 %v634_v50, %v1059_v46 }
 0x26f   :  { %v547_v57 = vrot.slane %v506_v53, %v546_v48  ;;  %v623_v48 = vsub.s32 %v620_v32, %v1059_v46 }
 0x270   :  { %v475_v60 = vpop.xlane.xlu0 %474 }
 0x271   :  { %v549_v0 = vsel %vm548_vm2, %v547_v57, %v542_v59  ;;  %v511_v13 = vadd.f32 %v1065_v38, %v475_v60  ;;  %v630_v57 = vsub.s32 %v627_v45, %v1059_v46 }
 0x272   :  { %v478_v2 = vpop.xlane.xlu1 %477  ;;  %v556_v6 = vsel %vm555_vm3, %v554_v3, %v549_v0 }
 0x273   :  { %v563_v17 = vsel %vm562_vm4, %v561_v9, %v556_v6  ;;  %v512_v24 = vadd.f32 %v1065_v38, %v478_v2  ;;  %v582_v27 = vrot.slane %v511_v13, %v581_v10 }
 0x274   :  { %v469_v5 = vpop.xlane.xlu0 %468 }
 0x275   :  { %v509_v7 = vadd.f32 %v1065_v38, %v469_v5  ;;  %v589_v36 = vrot.slane %v512_v24, %v588_v23 }
 0x276   :  { %v472_v12 = vpop.xlane.xlu1 %471 }
 0x277   :  { %v568_v14 = vrot.slane %v509_v7, %v567_v4  ;;  %v510_v15 = vadd.f32 %v1065_v38, %v472_v12  ;;  %v644_v4 = vsub.s32 %v641_v58, %v1059_v46 }
 0x278   :  { %v487_v19 = vpop.xlane.xlu0 %486 }
 0x279   :  { %v570_v20 = vsel %vm569_vm5, %v568_v14, %v563_v17  ;;  %v575_v21 = vrot.slane %v510_v15, %v574_v8  ;;  %v515_v37 = vadd.f32 %v1065_v38, %v487_v19 }
 0x27a   :  { %v490_v26 = vpop.xlane.xlu1 %489 }
 0x27b   :  { %v577_v28 = vsel %vm576_vm6, %v575_v21, %v570_v20  ;;  %v516_v41 = vadd.f32 %v1065_v38, %v490_v26  ;;  %v610_v54 = vrot.slane %v515_v37, %v609_v30 }
 0x27c   :  { %v481_v31 = vpop.xlane.xlu0 %480  ;;  %v584_v33 = vsel %vm583_vm7, %v582_v27, %v577_v28 }
 0x27d   :  { %v513_v34 = vadd.f32 %v1065_v38, %v481_v31  ;;  %v591_v47 = vsel %vm590_vm8, %v589_v36, %v584_v33  ;;  %v617_v55 = vrot.slane %v516_v41, %v616_v39 }
 0x27e   :  { %v484_v40 = vpop.xlane.xlu1 %483 }
 0x27f   :  { %v596_v43 = vrot.slane %v513_v34, %v595_v29  ;;  %v514_v44 = vadd.f32 %v1065_v38, %v484_v40 }
 0x280   :  { %v493_v49 = vpop.xlane.xlu0 %492 }
 0x281   :  { %v598_v51 = vsel %vm597_vm9, %v596_v43, %v591_v47  ;;  %v603_v52 = vrot.slane %v514_v44, %v602_v35  ;;  %v517_v53 = vadd.f32 %v1065_v38, %v493_v49 }
 0x283   :  { %v605_v56 = vsel %vm604_vm10, %v603_v52, %v598_v51  ;;  %v624_v60 = vrot.slane %v517_v53, %v623_v48 }
 0x284   :  { %v612_v59 = vsel %vm611_vm11, %v610_v54, %v605_v56  ;;  %v496_v61 = vpop.xlane.xlu1 %495  ;;  %v499_v63 = vpop.xlane.xlu0 %498 }
 0x285   :  { %v619_v0 = vsel %vm618_vm12, %v617_v55, %v612_v59  ;;  %v518_v1 = vadd.f32 %v1065_v38, %v496_v61  ;;  %v519_v2 = vadd.f32 %v1065_v38, %v499_v63 }
 0x286   :  { %v626_v5 = vsel %vm625_vm13, %v624_v60, %v619_v0 }
 0x287   :  { %v631_v3 = vrot.slane %v518_v1, %v630_v57  ;;  %v638_v6 = vrot.slane %v519_v2, %v637_v62 }
 0x288   :  { %v502_v7 = vpop.xlane.xlu1 %501 }
 0x289   :  { %v633_v42 = vsel %vm632_vm14, %v631_v3, %v626_v5  ;;  %v520_v8 = vadd.f32 %v1065_v38, %v502_v7 }
 0x28a   :  { %v640_v10 = vsel %vm639_vm15, %v638_v6, %v633_v42 }
 0x28b   :  { %v645_v9 = vrot.slane %v520_v8, %v644_v4 }
 0x28d   :  { %v647_v11 = vsel %vm646_vm0, %v645_v9, %v640_v10 }
 0x28e   :  { %649 = vst [vmem:[#allocation9] sm:$0x1] %v647_v11 }
 0x28f   :  { %901 = shalt.err (!%p898_p5)
}
 0x290   :  { %659 = dma.vmem_to_hbm [thread:$0]  %s657_s23, 16, %s1123_s7, [#allocation5]  }
 0x291   :  { %914 = dma.done.wait [#allocation5], 16  }
 0x292   :  { %915 = vsyncadd [#allocation5], 4294967280 }
 0x293   :  { %663 = vsyncpa [#allocation4], 1 }
 0x294   :  { %664 = vsyncpa [#allocation7], 1 }
 0x295   :  { %665 = vsyncpa [#allocation5], 1 }

</bundles_post_ra>
